<compile_context>
chip_gen: v7x
topology: tpu7x:2x2x1
jax: 0.10.0
libtpu: 0.0.40
codegen_flags: <defaults>
</compile_context>

<pallas_src>
import math
import functools

import jax
import jax.numpy as jnp
from jax.experimental import pallas as pl
from jax.experimental.pallas import tpu as pltpu


def _encoder_kernel(u_ref, e_ref, j_ref, v_ref, len_ref, out_ref, fin_ref, *,
                    one_minus_alpha, T, B):
    """Single-invocation kernel: full recurrence over T steps.

    u_ref   : (T*B, In)  time-major flattened input (f32)
    e_ref   : (In, D)    embedding, pre-scaled by alpha*input_gain (f32)
    j_ref   : (D, D)     J, pre-scaled by alpha*rnn_gain, bf16
    v_ref   : (T*B, 1)   validity mask (t < length[b]) as f32, time-major
    len_ref : (B, 1)     int32 sequence lengths
    out_ref : (T+1,B,D)  ret in time-major layout (row 0 = initial zero state)
    fin_ref : (B, D)     final state per batch row
    """
    D = j_ref.shape[1]

    # Hoisted input projection: ONE (T*B, In) @ (In, D) matmul, off the serial
    # recurrence path (alpha * input_gain already folded into e_ref).
    I_all = jnp.dot(u_ref[...], e_ref[...],
                    preferred_element_type=jnp.float32)          # (T*B, D)

    J = j_ref[...]                 # (D, D) bf16, loaded once, loop-invariant RHS
    lens = len_ref[...]            # (B, 1) int32

    # Validity mask, hoisted and pre-broadcast to full (8,128) tiles so the
    # per-step masking on the serial chain is a single VPU multiply.
    valid_full = jnp.broadcast_to(v_ref[...], (T * B, D))        # (T*B, D)

    zero = jnp.zeros((B, D), jnp.float32)
    out_ref[0] = zero              # ret[:, 0, :] = initial state = 0

    x = zero
    fin = zero                     # length == 0  =>  final state is 0
    # T is static and tiny: a Python loop fully unrolls at trace time, giving
    # the scheduler static, tile-aligned slice/store indices.
    for t in range(T):
        # Recurrent drive: tanh in bf16 feeding the MXU; f32 accumulate.
        xb = jnp.tanh(x.astype(jnp.bfloat16))
        rec = jnp.dot(xb, J, preferred_element_type=jnp.float32)
        # Leak + input term is independent of the matmul result -> scheduled
        # in parallel with the MXU on the serial chain.
        leak = one_minus_alpha * x + I_all[t * B:(t + 1) * B, :]
        new = (leak + rec) * valid_full[t * B:(t + 1) * B, :]

        out_ref[t + 1] = new                           # unmasked (8,128) store
        fin = jnp.where((t + 1) == lens, new, fin)     # off-chain select
        x = new

    fin_ref[...] = fin


@functools.partial(jax.jit,
                   static_argnames=("tau", "delta_t", "gain", "p", "input_gain"))
def encoder_forward(u, length, embedding, J, *,
                    tau, delta_t, gain=1.0, p=1.0, input_gain=1.0):
    """Pallas implementation of encoder.forward(u, length) (eval mode)."""
    B, T, In = u.shape
    D = J.shape[0]
    alpha = float(delta_t) / float(tau)
    assert 0.0 < alpha < 1.0
    rnn_gain = float(gain) / (float(D) ** float(p))

    length_i = length.astype(jnp.int32)

    # Time-major flatten so the kernel can do one hoisted input projection and
    # slice per-step rows at sublane-aligned offsets (multiples of B == 8).
    u_flat = jnp.transpose(u.astype(jnp.float32), (1, 0, 2)).reshape(T * B, In)
    # Fold alpha * input_gain into the embedding (off the serial path).
    e_scaled = embedding.astype(jnp.float32) * (alpha * float(input_gain))
    # Fold alpha * rnn_gain into J before the bf16 cast (scale-free for bf16).
    j_scaled = (J.astype(jnp.float32) * (alpha * rnn_gain)).astype(jnp.bfloat16)
    # Validity mask (t < length[b]), time-major, hoisted off the kernel chain.
    valid = (jnp.arange(T, dtype=jnp.int32)[:, None] < length_i[None, :]) \
        .astype(jnp.float32).reshape(T * B, 1)
    len2d = length_i.reshape(B, 1)

    kernel = functools.partial(_encoder_kernel,
                               one_minus_alpha=1.0 - alpha, T=T, B=B)

    vmem = pl.BlockSpec(memory_space=pltpu.MemorySpace.VMEM)
    states, final_state = pl.pallas_call(
        kernel,
        out_shape=(
            jax.ShapeDtypeStruct((T + 1, B, D), jnp.float32),   # x_0 .. x_T
            jax.ShapeDtypeStruct((B, D), jnp.float32),          # final_state
        ),
        in_specs=[vmem, vmem, vmem, vmem, vmem],
        out_specs=(vmem, vmem),
    )(u_flat, e_scaled, j_scaled, valid, len2d)

    # Single output transpose to the PyTorch convention [batch, time+1, D];
    # fused with the rest of the wrapper under jit.
    ret = jnp.transpose(states, (1, 0, 2))
    return ret, final_state


def _reference_forward(u, length, embedding, J, *, tau, delta_t,
                       gain=1.0, p=1.0, input_gain=1.0):
    """Pure-JAX reference of the same semantics (for a sanity check)."""
    B, T, In = u.shape
    D = J.shape[0]
    alpha = delta_t / tau
    rnn_gain = gain / (D ** p)
    x = jnp.zeros((B, D), jnp.float32)
    outs = [jnp.zeros((B, D), jnp.float32)]
    for t in range(T):
        I = u[:, t, :] @ embedding * input_gain
        new = (1 - alpha) * x + alpha * (jnp.tanh(x) @ J * rnn_gain + I)
        new = new * (t < length)[:, None].astype(jnp.float32)
        outs.append(new)
        x = new
    ret = jnp.stack(outs, axis=1)
    fin = ret[jnp.arange(B), length]
    return ret, fin


if __name__ == "__main__":
    # Hyperparameters (consistent with the module's __init__ defaults).
    tau, delta_t = 10.0, 1.0          # alpha = 0.1
    input_dim = 16
    encoder_dim = 128
    input_gain = 1.0
    init_gain = 1.0
    B, T = 8, 6

    key = jax.random.PRNGKey(0)
    k_u, k_J, k_E = jax.random.split(key, 3)

    # Parameters (deterministic, matching __init__ shapes / init scheme):
    #   J ~ randn(n, n) * sqrt(n) * init_gain   (init_method='randn', full rank)
    #   embedding ~ randn(input_dim, encoder_dim)  (fixed, not a Parameter)
    J = jax.random.normal(k_J, (encoder_dim, encoder_dim), jnp.float32) \
        * math.sqrt(encoder_dim) * init_gain
    embedding = jax.random.normal(k_E, (input_dim, encoder_dim), jnp.float32)

    # Inputs: u [batch, time, input_dim], length [batch] with max(length)==T.
    u = jax.random.normal(k_u, (B, T, input_dim), jnp.float32)
    length = jnp.array([6, 3, 5, 0, 6, 1, 4, 2], jnp.int32)

    ret, final_state = encoder_forward(
        u, length, embedding, J,
        tau=tau, delta_t=delta_t, input_gain=input_gain)
    jax.block_until_ready((ret, final_state))

    # Sanity check against a pure-JAX reference (loose tol: bf16 recurrent
    # matmul / bf16 tanh with f32 accumulate / f32 carried state).
    ret_ref, fin_ref = _reference_forward(
        u, length, embedding, J,
        tau=tau, delta_t=delta_t, input_gain=input_gain)
    assert ret.shape == (B, T + 1, encoder_dim)
    assert final_state.shape == (B, encoder_dim)
    assert jnp.allclose(ret, ret_ref, atol=5e-2, rtol=5e-2)
    assert jnp.allclose(final_state, fin_ref, atol=5e-2, rtol=5e-2)

    print("KERNEL_OK")
</pallas_src>

<mosaic_0001>
module attributes {stable_mosaic.version = 11 : i64} {
  func.func @_encoder_kernel(%arg0: memref<48x16xf32, #tpu.memory_space<vmem>>, %arg1: memref<16x128xf32, #tpu.memory_space<vmem>>, %arg2: memref<128x128xbf16, #tpu.memory_space<vmem>>, %arg3: memref<48x1xf32, #tpu.memory_space<vmem>>, %arg4: memref<8x1xi32, #tpu.memory_space<vmem>>, %arg5: memref<7x8x128xf32, #tpu.memory_space<vmem>>, %arg6: memref<8x128xf32, #tpu.memory_space<vmem>>) attributes {dimension_semantics = [], scalar_prefetch = 0 : i64, scratch_operands = 0 : i64, tpu.core_type = #tpu.core_type<tc>} {
    %c0 = arith.constant 0 : index
    %c0_0 = arith.constant 0 : index
    %0 = vector.load %arg0[%c0, %c0_0] : memref<48x16xf32, #tpu.memory_space<vmem>>, vector<48x16xf32>
    %c0_1 = arith.constant 0 : index
    %c0_2 = arith.constant 0 : index
    %1 = vector.load %arg1[%c0_1, %c0_2] : memref<16x128xf32, #tpu.memory_space<vmem>>, vector<16x128xf32>
    %cst = arith.constant dense<0.000000e+00> : vector<48x128xf32>
    %2 = tpu.matmul %0, %1, %cst {dimension_numbers = #tpu.dot_dimension_numbers<[1], [0], [0], [1], [0, 0, 1, 1], [], []>} : vector<48x16xf32>, vector<16x128xf32>, vector<48x128xf32> -> vector<48x128xf32>
    %c0_3 = arith.constant 0 : index
    %c0_4 = arith.constant 0 : index
    %3 = vector.load %arg2[%c0_3, %c0_4] : memref<128x128xbf16, #tpu.memory_space<vmem>>, vector<128x128xbf16>
    %c0_5 = arith.constant 0 : index
    %c0_6 = arith.constant 0 : index
    %4 = vector.load %arg4[%c0_5, %c0_6] : memref<8x1xi32, #tpu.memory_space<vmem>>, vector<8x1xi32>
    %c0_7 = arith.constant 0 : index
    %c0_8 = arith.constant 0 : index
    %5 = vector.load %arg3[%c0_7, %c0_8] : memref<48x1xf32, #tpu.memory_space<vmem>>, vector<48x1xf32>
    %6 = vector.shape_cast %5 : vector<48x1xf32> to vector<48x1xf32>
    %7 = vector.broadcast %6 : vector<48x1xf32> to vector<48x128xf32>
    %cst_9 = arith.constant 0.000000e+00 : f32
    %8 = vector.broadcast %cst_9 : f32 to vector<8x128xf32>
    %c0_10 = arith.constant 0 : index
    %c0_11 = arith.constant 0 : index
    %c0_12 = arith.constant 0 : index
    %9 = vector.load %arg5[%c0_10, %c0_11, %c0_12] : memref<7x8x128xf32, #tpu.memory_space<vmem>>, vector<1x8x128xf32>
    %10 = vector.shape_cast %9 : vector<1x8x128xf32> to vector<8x128xf32>
    %11 = vector.shape_cast %8 : vector<8x128xf32> to vector<1x8x128xf32>
    tpu.vector_store %arg5[%c0_10, %c0_11, %c0_12], %11 {strides = array<i32>} : memref<7x8x128xf32, #tpu.memory_space<vmem>>, vector<1x8x128xf32>,
    %12 = arith.truncf %8 : vector<8x128xf32> to vector<8x128xbf16>
    %13 = math.tanh %12 : vector<8x128xbf16>
    %cst_13 = arith.constant dense<0.000000e+00> : vector<8x128xf32>
    %14 = tpu.matmul %13, %3, %cst_13 {dimension_numbers = #tpu.dot_dimension_numbers<[1], [0], [0], [1], [0, 0, 1, 1], [], []>} : vector<8x128xbf16>, vector<128x128xbf16>, vector<8x128xf32> -> vector<8x128xf32>
    %cst_14 = arith.constant 0.899999976 : f32
    %15 = vector.broadcast %cst_14 : f32 to vector<8x128xf32>
    %16 = arith.mulf %15, %8 : vector<8x128xf32>
    %17 = vector.extract_strided_slice %2 {offsets = [0, 0], sizes = [8, 128], strides = [1, 1]} : vector<48x128xf32> to vector<8x128xf32>
    %18 = arith.addf %16, %17 : vector<8x128xf32>
    %19 = arith.addf %18, %14 : vector<8x128xf32>
    %20 = vector.extract_strided_slice %7 {offsets = [0, 0], sizes = [8, 128], strides = [1, 1]} : vector<48x128xf32> to vector<8x128xf32>
    %21 = arith.mulf %19, %20 : vector<8x128xf32>
    %c1 = arith.constant 1 : index
    %c0_15 = arith.constant 0 : index
    %c0_16 = arith.constant 0 : index
    %22 = vector.load %arg5[%c1, %c0_15, %c0_16] : memref<7x8x128xf32, #tpu.memory_space<vmem>>, vector<1x8x128xf32>
    %23 = vector.shape_cast %22 : vector<1x8x128xf32> to vector<8x128xf32>
    %24 = vector.shape_cast %21 : vector<8x128xf32> to vector<1x8x128xf32>
    tpu.vector_store %arg5[%c1, %c0_15, %c0_16], %24 {strides = array<i32>} : memref<7x8x128xf32, #tpu.memory_space<vmem>>, vector<1x8x128xf32>,
    %c1_i32 = arith.constant 1 : i32
    %25 = vector.broadcast %c1_i32 : i32 to vector<8x1xi32>
    %26 = arith.cmpi eq, %4, %25 : vector<8x1xi32>
    %27 = vector.shape_cast %26 : vector<8x1xi1> to vector<8x1xi1>
    %28 = vector.broadcast %27 : vector<8x1xi1> to vector<8x128xi1>
    %29 = arith.select %28, %21, %8 : vector<8x128xi1>, vector<8x128xf32>
    %30 = arith.truncf %21 : vector<8x128xf32> to vector<8x128xbf16>
    %31 = math.tanh %30 : vector<8x128xbf16>
    %cst_17 = arith.constant dense<0.000000e+00> : vector<8x128xf32>
    %32 = tpu.matmul %31, %3, %cst_17 {dimension_numbers = #tpu.dot_dimension_numbers<[1], [0], [0], [1], [0, 0, 1, 1], [], []>} : vector<8x128xbf16>, vector<128x128xbf16>, vector<8x128xf32> -> vector<8x128xf32>
    %cst_18 = arith.constant 0.899999976 : f32
    %33 = vector.broadcast %cst_18 : f32 to vector<8x128xf32>
    %34 = arith.mulf %33, %21 : vector<8x128xf32>
    %35 = vector.extract_strided_slice %2 {offsets = [8, 0], sizes = [8, 128], strides = [1, 1]} : vector<48x128xf32> to vector<8x128xf32>
    %36 = arith.addf %34, %35 : vector<8x128xf32>
    %37 = arith.addf %36, %32 : vector<8x128xf32>
    %38 = vector.extract_strided_slice %7 {offsets = [8, 0], sizes = [8, 128], strides = [1, 1]} : vector<48x128xf32> to vector<8x128xf32>
    %39 = arith.mulf %37, %38 : vector<8x128xf32>
    %c2 = arith.constant 2 : index
    %c0_19 = arith.constant 0 : index
    %c0_20 = arith.constant 0 : index
    %40 = vector.load %arg5[%c2, %c0_19, %c0_20] : memref<7x8x128xf32, #tpu.memory_space<vmem>>, vector<1x8x128xf32>
    %41 = vector.shape_cast %40 : vector<1x8x128xf32> to vector<8x128xf32>
    %42 = vector.shape_cast %39 : vector<8x128xf32> to vector<1x8x128xf32>
    tpu.vector_store %arg5[%c2, %c0_19, %c0_20], %42 {strides = array<i32>} : memref<7x8x128xf32, #tpu.memory_space<vmem>>, vector<1x8x128xf32>,
    %c2_i32 = arith.constant 2 : i32
    %43 = vector.broadcast %c2_i32 : i32 to vector<8x1xi32>
    %44 = arith.cmpi eq, %4, %43 : vector<8x1xi32>
    %45 = vector.shape_cast %44 : vector<8x1xi1> to vector<8x1xi1>
    %46 = vector.broadcast %45 : vector<8x1xi1> to vector<8x128xi1>
    %47 = arith.select %46, %39, %29 : vector<8x128xi1>, vector<8x128xf32>
    %48 = arith.truncf %39 : vector<8x128xf32> to vector<8x128xbf16>
    %49 = math.tanh %48 : vector<8x128xbf16>
    %cst_21 = arith.constant dense<0.000000e+00> : vector<8x128xf32>
    %50 = tpu.matmul %49, %3, %cst_21 {dimension_numbers = #tpu.dot_dimension_numbers<[1], [0], [0], [1], [0, 0, 1, 1], [], []>} : vector<8x128xbf16>, vector<128x128xbf16>, vector<8x128xf32> -> vector<8x128xf32>
    %cst_22 = arith.constant 0.899999976 : f32
    %51 = vector.broadcast %cst_22 : f32 to vector<8x128xf32>
    %52 = arith.mulf %51, %39 : vector<8x128xf32>
    %53 = vector.extract_strided_slice %2 {offsets = [16, 0], sizes = [8, 128], strides = [1, 1]} : vector<48x128xf32> to vector<8x128xf32>
    %54 = arith.addf %52, %53 : vector<8x128xf32>
    %55 = arith.addf %54, %50 : vector<8x128xf32>
    %56 = vector.extract_strided_slice %7 {offsets = [16, 0], sizes = [8, 128], strides = [1, 1]} : vector<48x128xf32> to vector<8x128xf32>
    %57 = arith.mulf %55, %56 : vector<8x128xf32>
    %c3 = arith.constant 3 : index
    %c0_23 = arith.constant 0 : index
    %c0_24 = arith.constant 0 : index
    %58 = vector.load %arg5[%c3, %c0_23, %c0_24] : memref<7x8x128xf32, #tpu.memory_space<vmem>>, vector<1x8x128xf32>
    %59 = vector.shape_cast %58 : vector<1x8x128xf32> to vector<8x128xf32>
    %60 = vector.shape_cast %57 : vector<8x128xf32> to vector<1x8x128xf32>
    tpu.vector_store %arg5[%c3, %c0_23, %c0_24], %60 {strides = array<i32>} : memref<7x8x128xf32, #tpu.memory_space<vmem>>, vector<1x8x128xf32>,
    %c3_i32 = arith.constant 3 : i32
    %61 = vector.broadcast %c3_i32 : i32 to vector<8x1xi32>
    %62 = arith.cmpi eq, %4, %61 : vector<8x1xi32>
    %63 = vector.shape_cast %62 : vector<8x1xi1> to vector<8x1xi1>
    %64 = vector.broadcast %63 : vector<8x1xi1> to vector<8x128xi1>
    %65 = arith.select %64, %57, %47 : vector<8x128xi1>, vector<8x128xf32>
    %66 = arith.truncf %57 : vector<8x128xf32> to vector<8x128xbf16>
    %67 = math.tanh %66 : vector<8x128xbf16>
    %cst_25 = arith.constant dense<0.000000e+00> : vector<8x128xf32>
    %68 = tpu.matmul %67, %3, %cst_25 {dimension_numbers = #tpu.dot_dimension_numbers<[1], [0], [0], [1], [0, 0, 1, 1], [], []>} : vector<8x128xbf16>, vector<128x128xbf16>, vector<8x128xf32> -> vector<8x128xf32>
    %cst_26 = arith.constant 0.899999976 : f32
    %69 = vector.broadcast %cst_26 : f32 to vector<8x128xf32>
    %70 = arith.mulf %69, %57 : vector<8x128xf32>
    %71 = vector.extract_strided_slice %2 {offsets = [24, 0], sizes = [8, 128], strides = [1, 1]} : vector<48x128xf32> to vector<8x128xf32>
    %72 = arith.addf %70, %71 : vector<8x128xf32>
    %73 = arith.addf %72, %68 : vector<8x128xf32>
    %74 = vector.extract_strided_slice %7 {offsets = [24, 0], sizes = [8, 128], strides = [1, 1]} : vector<48x128xf32> to vector<8x128xf32>
    %75 = arith.mulf %73, %74 : vector<8x128xf32>
    %c4 = arith.constant 4 : index
    %c0_27 = arith.constant 0 : index
    %c0_28 = arith.constant 0 : index
    %76 = vector.load %arg5[%c4, %c0_27, %c0_28] : memref<7x8x128xf32, #tpu.memory_space<vmem>>, vector<1x8x128xf32>
    %77 = vector.shape_cast %76 : vector<1x8x128xf32> to vector<8x128xf32>
    %78 = vector.shape_cast %75 : vector<8x128xf32> to vector<1x8x128xf32>
    tpu.vector_store %arg5[%c4, %c0_27, %c0_28], %78 {strides = array<i32>} : memref<7x8x128xf32, #tpu.memory_space<vmem>>, vector<1x8x128xf32>,
    %c4_i32 = arith.constant 4 : i32
    %79 = vector.broadcast %c4_i32 : i32 to vector<8x1xi32>
    %80 = arith.cmpi eq, %4, %79 : vector<8x1xi32>
    %81 = vector.shape_cast %80 : vector<8x1xi1> to vector<8x1xi1>
    %82 = vector.broadcast %81 : vector<8x1xi1> to vector<8x128xi1>
    %83 = arith.select %82, %75, %65 : vector<8x128xi1>, vector<8x128xf32>
    %84 = arith.truncf %75 : vector<8x128xf32> to vector<8x128xbf16>
    %85 = math.tanh %84 : vector<8x128xbf16>
    %cst_29 = arith.constant dense<0.000000e+00> : vector<8x128xf32>
    %86 = tpu.matmul %85, %3, %cst_29 {dimension_numbers = #tpu.dot_dimension_numbers<[1], [0], [0], [1], [0, 0, 1, 1], [], []>} : vector<8x128xbf16>, vector<128x128xbf16>, vector<8x128xf32> -> vector<8x128xf32>
    %cst_30 = arith.constant 0.899999976 : f32
    %87 = vector.broadcast %cst_30 : f32 to vector<8x128xf32>
    %88 = arith.mulf %87, %75 : vector<8x128xf32>
    %89 = vector.extract_strided_slice %2 {offsets = [32, 0], sizes = [8, 128], strides = [1, 1]} : vector<48x128xf32> to vector<8x128xf32>
    %90 = arith.addf %88, %89 : vector<8x128xf32>
    %91 = arith.addf %90, %86 : vector<8x128xf32>
    %92 = vector.extract_strided_slice %7 {offsets = [32, 0], sizes = [8, 128], strides = [1, 1]} : vector<48x128xf32> to vector<8x128xf32>
    %93 = arith.mulf %91, %92 : vector<8x128xf32>
    %c5 = arith.constant 5 : index
    %c0_31 = arith.constant 0 : index
    %c0_32 = arith.constant 0 : index
    %94 = vector.load %arg5[%c5, %c0_31, %c0_32] : memref<7x8x128xf32, #tpu.memory_space<vmem>>, vector<1x8x128xf32>
    %95 = vector.shape_cast %94 : vector<1x8x128xf32> to vector<8x128xf32>
    %96 = vector.shape_cast %93 : vector<8x128xf32> to vector<1x8x128xf32>
    tpu.vector_store %arg5[%c5, %c0_31, %c0_32], %96 {strides = array<i32>} : memref<7x8x128xf32, #tpu.memory_space<vmem>>, vector<1x8x128xf32>,
    %c5_i32 = arith.constant 5 : i32
    %97 = vector.broadcast %c5_i32 : i32 to vector<8x1xi32>
    %98 = arith.cmpi eq, %4, %97 : vector<8x1xi32>
    %99 = vector.shape_cast %98 : vector<8x1xi1> to vector<8x1xi1>
    %100 = vector.broadcast %99 : vector<8x1xi1> to vector<8x128xi1>
    %101 = arith.select %100, %93, %83 : vector<8x128xi1>, vector<8x128xf32>
    %102 = arith.truncf %93 : vector<8x128xf32> to vector<8x128xbf16>
    %103 = math.tanh %102 : vector<8x128xbf16>
    %cst_33 = arith.constant dense<0.000000e+00> : vector<8x128xf32>
    %104 = tpu.matmul %103, %3, %cst_33 {dimension_numbers = #tpu.dot_dimension_numbers<[1], [0], [0], [1], [0, 0, 1, 1], [], []>} : vector<8x128xbf16>, vector<128x128xbf16>, vector<8x128xf32> -> vector<8x128xf32>
    %cst_34 = arith.constant 0.899999976 : f32
    %105 = vector.broadcast %cst_34 : f32 to vector<8x128xf32>
    %106 = arith.mulf %105, %93 : vector<8x128xf32>
    %107 = vector.extract_strided_slice %2 {offsets = [40, 0], sizes = [8, 128], strides = [1, 1]} : vector<48x128xf32> to vector<8x128xf32>
    %108 = arith.addf %106, %107 : vector<8x128xf32>
    %109 = arith.addf %108, %104 : vector<8x128xf32>
    %110 = vector.extract_strided_slice %7 {offsets = [40, 0], sizes = [8, 128], strides = [1, 1]} : vector<48x128xf32> to vector<8x128xf32>
    %111 = arith.mulf %109, %110 : vector<8x128xf32>
    %c6 = arith.constant 6 : index
    %c0_35 = arith.constant 0 : index
    %c0_36 = arith.constant 0 : index
    %112 = vector.load %arg5[%c6, %c0_35, %c0_36] : memref<7x8x128xf32, #tpu.memory_space<vmem>>, vector<1x8x128xf32>
    %113 = vector.shape_cast %112 : vector<1x8x128xf32> to vector<8x128xf32>
    %114 = vector.shape_cast %111 : vector<8x128xf32> to vector<1x8x128xf32>
    tpu.vector_store %arg5[%c6, %c0_35, %c0_36], %114 {strides = array<i32>} : memref<7x8x128xf32, #tpu.memory_space<vmem>>, vector<1x8x128xf32>,
    %c6_i32 = arith.constant 6 : i32
    %115 = vector.broadcast %c6_i32 : i32 to vector<8x1xi32>
    %116 = arith.cmpi eq, %4, %115 : vector<8x1xi32>
    %117 = vector.shape_cast %116 : vector<8x1xi1> to vector<8x1xi1>
    %118 = vector.broadcast %117 : vector<8x1xi1> to vector<8x128xi1>
    %119 = arith.select %118, %111, %101 : vector<8x128xi1>, vector<8x128xf32>
    %c0_37 = arith.constant 0 : index
    %c0_38 = arith.constant 0 : index
    %120 = vector.load %arg6[%c0_37, %c0_38] : memref<8x128xf32, #tpu.memory_space<vmem>>, vector<8x128xf32>
    tpu.vector_store %arg6[%c0_37, %c0_38], %119 {strides = array<i32>} : memref<8x128xf32, #tpu.memory_space<vmem>>, vector<8x128xf32>,
    return
  }
}

</mosaic_0001>

<bundles_post_ra>
// kernel: encoder_forward.1
= control target key start
LH: loop header
LB: loop body
LE: loop exit
PB: predicated region body
PF: predicated region fallthrough
CT: control target
= control target key end

     0   :  { %12 = vsyncpa [#allocation3], 0  ;;  %v896_v1 = vmov 0.0   ;;  %vm897_vm0 = vmmov 0   ;;  %v898_v3 = vmov 0   ;;  %vm33_vm1 = vcmask 130048   ;;  %s1201_s0 = inlined_call_operand.vmem [shape: f32[48,16], index: 0, kind: input, shape index: {}]   ;;  %s1202_s1 = inlined_call_operand.vmem [shape: f32[16,128], index: 1, kind: input, shape index: {}]   ;;  %s1203_s2 = inlined_call_operand.vmem [shape: bf16[128,128], index: 2, kind: input, shape index: {}]   ;;  %s1204_s3 = inlined_call_operand.vmem [shape: f32[48,1], index: 3, kind: input, shape index: {}]   ;;  %s1205_s4 = inlined_call_operand.vmem [shape: s32[8,1], index: 4, kind: input, shape index: {}]   ;;  %s1206_s5 = inlined_call_operand.hbm [shape: f32[7,8,128], index: 5, kind: output, shape index: {0}]   ;;  %s1207_s6 = inlined_call_operand.hbm [shape: f32[8,128], index: 6, kind: output, shape index: {1}]  }
   0x1   :  { %v941_v0 = vld [vmem:[%s1203_s2] sm:$0xff]   ;;  %697 = vmatprep.subr.bf16.mxu1 %v896_v1  ;;  %170 = vst [vmem:[#allocation2] sm:$0xff] %v896_v1  ;;  %v949_v2 = vld [vmem:[%s1203_s2 + $0x8] sm:$0xff]   ;;  %713 = vmatprep.mubr.msk.bf16.mxu1 %vm897_vm0, %v896_v1  ;;  %v960_v4 = vld [vmem:[%s1203_s2 + $0x10] sm:$0xff]  }
   0x2   :  { %698 = vmatpush3.bf16.msra.mxu1 %v941_v0  ;;  %828 = vset.pattern.permute.xlu0 %v898_v3  ;;  %v31_v5 = vld [vmem:[%s1202_s1] sm:$0xff]  ;;  %v32_v6 = vld [vmem:[%s1202_s1 + $0x8] sm:$0xff]  ;;  %v980_v10 = vld [vmem:[%s1203_s2 + $0x18] sm:$0xff]  }
   0x3   :  { %699 = vmatprep.subr.bf16.mxu1 %v896_v1  ;;  %829 = vset.pattern.permute.xlu1 %v898_v3  ;;  %v25_v7 = vld [vmem:[%s1201_s0] sm:$0xff]  ;;  %v817_v8 = vpack.c.bf16 %v32_v6, %v31_v5  ;;  %v166_v11 = vld [vmem:[%s1204_s3 + $0x10] sm:$0xff]  ;;  %v26_v12 = vld [vmem:[%s1201_s0 + $0x8] sm:$0xff] }
   0x4   :  { %688 = vmatprep.mubr.msk.f32.mxu0 %vm33_vm1, %v25_v7  ;;  %v164_v9 = vld [vmem:[%s1204_s3] sm:$0xff]  ;;  %384 = vperm.xlu1 %829, %v166_v11  }
   0x5   :  { %818 = vmatprep.subr.bf16.mxu0 %v817_v8  ;;  %264 = vperm.xlu0 %828, %v164_v9  }
   0x6   :  { %700 = vmatpush3.bf16.msra.mxu1 %v949_v2  ;;  %820 = vmatpush3.bf16.msra.mxu0 %v817_v8 }
   0x7   :  { %701 = vmatprep.subr.bf16.mxu1 %v896_v1 }
   0xa   :  { %702 = vmatpush3.bf16.msra.mxu1 %v960_v4 }
   0xb   :  { %703 = vmatprep.subr.bf16.mxu1 %v896_v1 }
   0xc   :  { %13 = vsyncpa [#allocation5], 0  ;;  %v165_v13 = vld [vmem:[%s1204_s3 + $0x8] sm:$0xff]  ;;  %v995_v14 = vld [vmem:[%s1205_s4] sm:$0xff]  ;;  %717 = vmatprep.subr.bf16.mxu0 %v896_v1  ;;  %689 = vmatmul.mubr.msk.f32.vlgmr.msra.gmra.mrb[0].mxu0 %vm33_vm1, %v26_v12  ;;  %s900_s15 = smov [#allocation4]  }
   0xd   :  { %v167_v15 = vld [vmem:[%s1204_s3 + $0x18] sm:$0xff]  ;;  %v1005_v16 = vld [vmem:[%s1203_s2 + $0x20] sm:$0xff]   ;;  %vm270_vm2 = vcmp.eq.s32.totalorder %v995_v14, 1  ;;  %718 = vmatpush3.bf16.msra.mxu0 %v941_v0  ;;  %324 = vperm.xlu0 %828, %v165_v13   ;;  %v1020_v19 = vld [vmem:[%s1203_s2 + $0x28] sm:$0xff]   ;;  %vm330_vm3 = vcmp.eq.s32.totalorder %v995_v14, 2  ;;  %vm450_vm4 = vcmp.eq.s32.totalorder %v995_v14, 4 }
   0xe   :  { %704 = vmatpush3.bf16.msra.mxu1 %v980_v10  ;;  %444 = vperm.xlu1 %829, %v167_v15   ;;  %v168_v17 = vld [vmem:[%s1204_s3 + $0x20] sm:$0xff]  ;;  %v271_v18 = vsel %vm270_vm2, 1, %v898_v3  ;;  %v331_v20 = vsel %vm330_vm3, 1, %v898_v3  ;;  %v1031_v21 = vld [vmem:[%s1203_s2 + $0x30] sm:$0xff]   ;;  %v451_v22 = vsel %vm450_vm4, 1, %v898_v3  ;;  %v1042_v23 = vld [vmem:[%s1203_s2 + $0x38] sm:$0xff]  }
   0xf   :  { %705 = vmatprep.subr.bf16.mxu1 %v896_v1  ;;  %719 = vmatprep.subr.bf16.mxu0 %v896_v1  ;;  %v169_v24 = vld [vmem:[%s1204_s3 + $0x28] sm:$0xff]  ;;  %v27_v25 = vld [vmem:[%s1201_s0 + $0x10] sm:$0xff]  ;;  %v28_v26 = vld [vmem:[%s1201_s0 + $0x18] sm:$0xff]  ;;  %vm390_vm5 = vcmp.eq.s32.totalorder %v995_v14, 3  ;;  %vm510_vm6 = vcmp.eq.s32.totalorder %v995_v14, 5  ;;  %vm570_vm7 = vcmp.eq.s32.totalorder %v995_v14, 6 }
  0x10   :  { %v29_v27 = vld [vmem:[%s1201_s0 + $0x20] sm:$0xff]  ;;  %691 = vmatprep.mubr.msk.f32.mxu0 %vm33_vm1, %v27_v25  ;;  %v30_v28 = vld [vmem:[%s1201_s0 + $0x28] sm:$0xff]  ;;  %v391_v46 = vsel %vm390_vm5, 1, %v898_v3  ;;  %v511_v47 = vsel %vm510_vm6, 1, %v898_v3  ;;  %v571_v48 = vsel %vm570_vm7, 1, %v898_v3  ;;  %s899_s0 = smov [#allocation2]  }
  0x11   :  { %720 = vmatpush3.bf16.msra.mxu0 %v949_v2  ;;  %504 = vperm.xlu0 %828, %v168_v17   ;;  %s583_s14 = sshll.u32 %s899_s0, 4  ;;  %s596_s16 = sshll.u32 %s900_s15, 4  ;;  %s584_s14 = int_to_ptr.vmem [resolvable:$true] %s583_s14  ;;  %s1170_s16 = int_to_ptr.vmem [resolvable:$true] %s596_s16 }
  0x12   :  { %706 = vmatpush3.bf16.msra.mxu1 %v1005_v16  ;;  %273 = vperm.xlu1 %829, %v271_v18   ;;  %s848_s17 = scalar_lea.vmem %s584_s14, 896  ;;  %p853_p1 = scmp.lt.s32.totalorder %s584_s14, %s584_s14 }
  0x13   :  { %707 = vmatprep.subr.bf16.mxu1 %v896_v1  ;;  %721 = vmatprep.subr.bf16.mxu0 %v896_v1  ;;  %p849_p0 = scmp.ne.s32.totalorder %s584_s14, %s848_s17  ;;  %p854_p2 = scmp.lt.s32.totalorder %s848_s17, %s848_s17 }
  0x14   :  { %692 = vmatmul.mubr.msk.f32.gmra.mrb[2].mxu0 %vm33_vm1, %v28_v26 }
  0x15   :  { %722 = vmatpush3.bf16.msra.mxu0 %v960_v4  ;;  %333 = vperm.xlu0 %828, %v331_v20   ;;  %p855_p3 = por %p854_p2, %p853_p1 }
  0x16   :  { %708 = vmatpush3.bf16.msra.mxu1 %v1020_v19  ;;  %723 = vmatprep.subr.bf16.mxu0 %v896_v1 }
  0x17   :  { %709 = vmatprep.subr.bf16.mxu1 %v896_v1  ;;  %694 = vmatprep.mubr.msk.f32.mxu0 %vm33_vm1, %v29_v27  ;;  %p856_p4 = pnand %p855_p3, %p849_p0 }
  0x18   :  { %695 = vmatmul.mubr.msk.f32.gmra.mrb[4].mxu0 %vm33_vm1, %v30_v28  ;;  %393 = vperm.xlu1 %829, %v391_v46  }
  0x19   :  { %724 = vmatpush3.bf16.msra.mxu0 %v980_v10  ;;  %453 = vperm.xlu0 %828, %v451_v22  }
  0x1a   :  { %710 = vmatpush3.bf16.msra.mxu1 %v1031_v21  ;;  %725 = vmatprep.subr.bf16.mxu0 %v896_v1 }
  0x1b   :  { %711 = vmatprep.subr.bf16.mxu1 %v896_v1  ;;  %733 = vmatprep.mubr.msk.bf16.mxu0 %vm897_vm0, %v896_v1 }
  0x1c   :  { %513 = vperm.xlu1 %829, %v511_v47  }
  0x1d   :  { %726 = vmatpush3.bf16.msra.mxu0 %v1005_v16  ;;  %564 = vperm.xlu0 %828, %v169_v24  }
  0x1e   :  { %712 = vmatpush3.bf16.msra.mxu1 %v1042_v23  ;;  %727 = vmatprep.subr.bf16.mxu0 %v896_v1 }
  0x1f   :  { %737 = vmatprep.subr.bf16.mxu1 %v896_v1 }
  0x20   :  { %573 = vperm.xlu1 %829, %v571_v48  }
  0x21   :  { %714 = vmatmul.mubr.bf16.vlgmr.msra.gmra.mrb[0].mxu1 %v898_v3  ;;  %728 = vmatpush3.bf16.msra.mxu0 %v1020_v19 }
  0x22   :  { %738 = vmatpush3.bf16.msra.mxu1 %v941_v0  ;;  %753 = vmatprep.mubr.msk.bf16.mxu1 %vm897_vm0, %v896_v1 }
  0x23   :  { %739 = vmatprep.subr.bf16.mxu1 %v896_v1  ;;  %729 = vmatprep.subr.bf16.mxu0 %v896_v1 }
  0x25   :  { %730 = vmatpush3.bf16.msra.mxu0 %v1031_v21 }
  0x26   :  { %740 = vmatpush3.bf16.msra.mxu1 %v949_v2  ;;  %731 = vmatprep.subr.bf16.mxu0 %v896_v1 }
  0x27   :  { %741 = vmatprep.subr.bf16.mxu1 %v896_v1 }
  0x29   :  { %732 = vmatpush3.bf16.msra.mxu0 %v1042_v23 }
  0x2a   :  { %742 = vmatpush3.bf16.msra.mxu1 %v960_v4  ;;  %757 = vmatprep.subr.bf16.mxu0 %v896_v1 }
  0x2b   :  { %743 = vmatprep.subr.bf16.mxu1 %v896_v1 }
  0x2e   :  { %744 = vmatpush3.bf16.msra.mxu1 %v980_v10 }
  0x2f   :  { %745 = vmatprep.subr.bf16.mxu1 %v896_v1 }
  0x32   :  { %746 = vmatpush3.bf16.msra.mxu1 %v1005_v16 }
  0x33   :  { %747 = vmatprep.subr.bf16.mxu1 %v896_v1 }
  0x36   :  { %748 = vmatpush3.bf16.msra.mxu1 %v1020_v19 }
  0x37   :  { %749 = vmatprep.subr.bf16.mxu1 %v896_v1 }
  0x3a   :  { %750 = vmatpush3.bf16.msra.mxu1 %v1031_v21 }
  0x3b   :  { %751 = vmatprep.subr.bf16.mxu1 %v896_v1 }
  0x3e   :  { %752 = vmatpush3.bf16.msra.mxu1 %v1042_v23 }
  0x3f   :  { %777 = vmatprep.subr.bf16.mxu1 %v896_v1 }
  0x83   :  { %v385_v49 = vpop.permute.xlu1 %384 }
  0x84   :  { %v265_v34 = vpop.permute.xlu0 %264 }
  0x8c   :  { %v325_v50 = vpop.permute.xlu0 %324 }
  0x8d   :  { %v1127_v51 = vpop.permute.xlu1 %444 }
  0x90   :  { %v1129_v52 = vpop.permute.xlu0 %504 }
  0x91   :  { %v274_v53 = vpop.permute.xlu1 %273 }
  0x92   :  { %vm275_vm8 = vcmp.eq.s32.totalorder %v274_v53, 1 }
  0x94   :  { %v334_v58 = vpop.permute.xlu0 %333 }
  0x95   :  { %vm335_vm9 = vcmp.eq.s32.totalorder %v334_v58, 1 }
  0x97   :  { %v394_v8 = vpop.permute.xlu1 %393 }
  0x98   :  { %vm395_vm10 = vcmp.eq.s32.totalorder %v394_v8, 1  ;;  %v454_v24 = vpop.permute.xlu0 %453 }
  0x99   :  { %vm455_vm11 = vcmp.eq.s32.totalorder %v454_v24, 1 }
  0xdf   :  { %v690_v29 = vpop.f32.mrb[0].mxu0 }
  0xe0   :  { %v118_v30 = vpop.f32.mrb[1].mxu0 }
  0xe7   :  { %v1115_v42 = vpop.f32.mrb[2].mxu0 }
  0xe8   :  { %v128_v43 = vpop.f32.mrb[3].mxu0 }
  0xeb   :  { %v1117_v44 = vpop.f32.mrb[4].mxu0 }
  0xec   :  { %v1119_v45 = vpop.f32.mrb[5].mxu0 }
  0xf4   :  { %v254_v31 = vpop.f32.mrb[0].mxu1 }
  0xf5   :  { %v261_v32 = vadd.f32 %v254_v31, %v118_v30  ;;  %v715_v33 = vpop.f32.mrb[1].mxu1  ;;  %v514_v31 = vpop.permute.xlu1 %513 }
  0xf6   :  { %v257_v35 = vpop.f32.mrb[2].mxu1  ;;  %vm515_vm12 = vcmp.eq.s32.totalorder %v514_v31, 1 }
  0xf7   :  { %v267_v36 = vmul.f32 %v265_v34, %v261_v32  ;;  %v716_v37 = vpop.f32.mrb[3].mxu1 }
  0xf9   :  { %269 = vst [vmem:[#allocation2 + $0x8] sm:$0xff] %v267_v36  ;;  %v277_v38 = vpack.c.bf16 %v267_v36, %v267_v36  ;;  %v319_v39 = vmul.f32 0.9, %v267_v36  ;;  %v276_v61 = vsel %vm275_vm8, %v267_v36, 0.0 }
  0xfb   :  { %838 = vtanh.bf16 %v277_v38  ;;  %v320_v40 = vadd.f32 %v690_v29, %v319_v39 }
 0x106   :  { %v839_v41 = vpop.eup %838 }
 0x107   :  { %734 = vmatmul.mubr.bf16.vlgmr.msra.gmra.mrb[8].mxu0 %v839_v41 }
 0x108   :  { %758 = vmatpush3.bf16.msra.mxu0 %v941_v0  ;;  %773 = vmatprep.mubr.msk.bf16.mxu0 %vm897_vm0, %v896_v1 }
 0x109   :  { %759 = vmatprep.subr.bf16.mxu0 %v896_v1 }
 0x10c   :  { %760 = vmatpush3.bf16.msra.mxu0 %v949_v2 }
 0x10d   :  { %761 = vmatprep.subr.bf16.mxu0 %v896_v1 }
 0x110   :  { %762 = vmatpush3.bf16.msra.mxu0 %v960_v4 }
 0x111   :  { %763 = vmatprep.subr.bf16.mxu0 %v896_v1 }
 0x114   :  { %764 = vmatpush3.bf16.msra.mxu0 %v980_v10 }
 0x115   :  { %765 = vmatprep.subr.bf16.mxu0 %v896_v1 }
 0x118   :  { %766 = vmatpush3.bf16.msra.mxu0 %v1005_v16 }
 0x119   :  { %767 = vmatprep.subr.bf16.mxu0 %v896_v1 }
 0x11c   :  { %768 = vmatpush3.bf16.msra.mxu0 %v1020_v19 }
 0x11d   :  { %769 = vmatprep.subr.bf16.mxu0 %v896_v1 }
 0x120   :  { %770 = vmatpush3.bf16.msra.mxu0 %v1031_v21 }
 0x121   :  { %771 = vmatprep.subr.bf16.mxu0 %v896_v1 }
 0x124   :  { %772 = vmatpush3.bf16.msra.mxu0 %v1042_v23 }
 0x125   :  { %797 = vmatprep.subr.bf16.mxu0 %v896_v1 }
 0x1da   :  { %v313_v54 = vpop.f32.mrb[8].mxu0 }
 0x1db   :  { %v321_v55 = vadd.f32 %v320_v40, %v313_v54  ;;  %v735_v56 = vpop.f32.mrb[9].mxu0  ;;  %v574_v40 = vpop.permute.xlu1 %573 }
 0x1dc   :  { %v316_v57 = vpop.f32.mrb[10].mxu0  ;;  %vm575_vm13 = vcmp.eq.s32.totalorder %v574_v40, 1 }
 0x1dd   :  { %v327_v59 = vmul.f32 %v325_v50, %v321_v55  ;;  %v736_v60 = vpop.f32.mrb[11].mxu0 }
 0x1df   :  { %329 = vst [vmem:[#allocation2 + $0x10] sm:$0xff] %v327_v59  ;;  %v336_v62 = vsel %vm335_vm9, %v327_v59, %v276_v61  ;;  %v337_v63 = vpack.c.bf16 %v327_v59, %v327_v59  ;;  %v379_v3 = vmul.f32 0.9, %v327_v59 }
 0x1e1   :  { %840 = vtanh.bf16 %v337_v63  ;;  %v380_v5 = vadd.f32 %v379_v3, %v128_v43  ;;  %v565_v43 = vpop.permute.xlu0 %564 }
 0x1ec   :  { %v841_v6 = vpop.eup %840 }
 0x1ed   :  { %754 = vmatmul.mubr.bf16.vlgmr.msra.gmra.mrb[4].mxu1 %v841_v6 }
 0x1ee   :  { %778 = vmatpush3.bf16.msra.mxu1 %v941_v0  ;;  %793 = vmatprep.mubr.msk.bf16.mxu1 %vm897_vm0, %v896_v1 }
 0x1ef   :  { %779 = vmatprep.subr.bf16.mxu1 %v896_v1 }
 0x1f2   :  { %780 = vmatpush3.bf16.msra.mxu1 %v949_v2 }
 0x1f3   :  { %781 = vmatprep.subr.bf16.mxu1 %v896_v1 }
 0x1f6   :  { %782 = vmatpush3.bf16.msra.mxu1 %v960_v4 }
 0x1f7   :  { %783 = vmatprep.subr.bf16.mxu1 %v896_v1 }
 0x1fa   :  { %784 = vmatpush3.bf16.msra.mxu1 %v980_v10 }
 0x1fb   :  { %785 = vmatprep.subr.bf16.mxu1 %v896_v1 }
 0x1fe   :  { %786 = vmatpush3.bf16.msra.mxu1 %v1005_v16 }
 0x1ff   :  { %787 = vmatprep.subr.bf16.mxu1 %v896_v1 }
 0x202   :  { %788 = vmatpush3.bf16.msra.mxu1 %v1020_v19 }
 0x203   :  { %789 = vmatprep.subr.bf16.mxu1 %v896_v1 }
 0x206   :  { %790 = vmatpush3.bf16.msra.mxu1 %v1031_v21 }
 0x207   :  { %791 = vmatprep.subr.bf16.mxu1 %v896_v1 }
 0x20a   :  { %792 = vmatpush3.bf16.msra.mxu1 %v1042_v23 }
 0x2c0   :  { %v373_v7 = vpop.f32.mrb[4].mxu1 }
 0x2c1   :  { %v381_v9 = vadd.f32 %v380_v5, %v373_v7  ;;  %v755_v11 = vpop.f32.mrb[5].mxu1 }
 0x2c2   :  { %v376_v12 = vpop.f32.mrb[6].mxu1 }
 0x2c3   :  { %v387_v13 = vmul.f32 %v385_v49, %v381_v9  ;;  %v756_v14 = vpop.f32.mrb[7].mxu1 }
 0x2c5   :  { %389 = vst [vmem:[#allocation2 + $0x18] sm:$0xff] %v387_v13  ;;  %v397_v15 = vpack.c.bf16 %v387_v13, %v387_v13  ;;  %v439_v17 = vmul.f32 0.9, %v387_v13  ;;  %v396_v18 = vsel %vm395_vm10, %v387_v13, %v336_v62 }
 0x2c7   :  { %842 = vtanh.bf16 %v397_v15  ;;  %v440_v20 = vadd.f32 %v1115_v42, %v439_v17 }
 0x2d2   :  { %v843_v22 = vpop.eup %842 }
 0x2d3   :  { %774 = vmatmul.mubr.bf16.vlgmr.msra.gmra.mrb[12].mxu0 %v843_v22 }
 0x2d4   :  { %798 = vmatpush3.bf16.msra.mxu0 %v941_v0  ;;  %813 = vmatprep.mubr.msk.bf16.mxu0 %vm897_vm0, %v896_v1 }
 0x2d5   :  { %799 = vmatprep.subr.bf16.mxu0 %v896_v1 }
 0x2d8   :  { %800 = vmatpush3.bf16.msra.mxu0 %v949_v2 }
 0x2d9   :  { %801 = vmatprep.subr.bf16.mxu0 %v896_v1 }
 0x2dc   :  { %802 = vmatpush3.bf16.msra.mxu0 %v960_v4 }
 0x2dd   :  { %803 = vmatprep.subr.bf16.mxu0 %v896_v1 }
 0x2e0   :  { %804 = vmatpush3.bf16.msra.mxu0 %v980_v10 }
 0x2e1   :  { %805 = vmatprep.subr.bf16.mxu0 %v896_v1 }
 0x2e4   :  { %806 = vmatpush3.bf16.msra.mxu0 %v1005_v16 }
 0x2e5   :  { %807 = vmatprep.subr.bf16.mxu0 %v896_v1 }
 0x2e8   :  { %808 = vmatpush3.bf16.msra.mxu0 %v1020_v19 }
 0x2e9   :  { %809 = vmatprep.subr.bf16.mxu0 %v896_v1 }
 0x2ec   :  { %810 = vmatpush3.bf16.msra.mxu0 %v1031_v21 }
 0x2ed   :  { %811 = vmatprep.subr.bf16.mxu0 %v896_v1 }
 0x2f0   :  { %812 = vmatpush3.bf16.msra.mxu0 %v1042_v23 }
 0x3a6   :  { %v433_v0 = vpop.f32.mrb[12].mxu0 }
 0x3a7   :  { %v441_v2 = vadd.f32 %v440_v20, %v433_v0  ;;  %v775_v4 = vpop.f32.mrb[13].mxu0 }
 0x3a8   :  { %v436_v10 = vpop.f32.mrb[14].mxu0 }
 0x3a9   :  { %v447_v25 = vmul.f32 %v1127_v51, %v441_v2  ;;  %v776_v16 = vpop.f32.mrb[15].mxu0 }
 0x3ab   :  { %449 = vst [vmem:[#allocation2 + $0x20] sm:$0xff] %v447_v25  ;;  %v457_v26 = vpack.c.bf16 %v447_v25, %v447_v25  ;;  %v499_v19 = vmul.f32 0.9, %v447_v25  ;;  %v456_v27 = vsel %vm455_vm11, %v447_v25, %v396_v18 }
 0x3ad   :  { %844 = vtanh.bf16 %v457_v26  ;;  %v500_v21 = vadd.f32 %v499_v19, %v1119_v45 }
 0x3b8   :  { %v845_v28 = vpop.eup %844 }
 0x3b9   :  { %794 = vmatmul.mubr.bf16.vlgmr.msra.gmra.mrb[8].mxu1 %v845_v28 }
 0x48c   :  { %v493_v1 = vpop.f32.mrb[8].mxu1 }
 0x48d   :  { %v501_v23 = vadd.f32 %v500_v21, %v493_v1  ;;  %v795_v29 = vpop.f32.mrb[9].mxu1 }
 0x48e   :  { %v496_v30 = vpop.f32.mrb[10].mxu1 }
 0x48f   :  { %v507_v32 = vmul.f32 %v1129_v52, %v501_v23  ;;  %v796_v33 = vpop.f32.mrb[11].mxu1 }
 0x491   :  { %509 = vst [vmem:[#allocation2 + $0x28] sm:$0xff] %v507_v32  ;;  %v517_v34 = vpack.c.bf16 %v507_v32, %v507_v32  ;;  %v559_v35 = vmul.f32 0.9, %v507_v32  ;;  %v516_v36 = vsel %vm515_vm12, %v507_v32, %v456_v27 }
 0x493   :  { %846 = vtanh.bf16 %v517_v34  ;;  %v560_v37 = vadd.f32 %v1117_v44, %v559_v35 }
 0x49e   :  { %v847_v38 = vpop.eup %846 }
 0x49f   :  { %814 = vmatmul.mubr.bf16.vlgmr.msra.gmra.mrb[16].mxu0 %v847_v38 }
 0x572   :  { %v553_v39 = vpop.f32.mrb[16].mxu0 }
 0x573   :  { %v561_v41 = vadd.f32 %v560_v37, %v553_v39  ;;  %v815_v42 = vpop.f32.mrb[17].mxu0 }
 0x574   :  { %v556_v45 = vpop.f32.mrb[18].mxu0 }
 0x575   :  { %v567_v46 = vmul.f32 %v565_v43, %v561_v41  ;;  %v816_v47 = vpop.f32.mrb[19].mxu0 }
 0x577   :  { %569 = vst [vmem:[#allocation2 + $0x30] sm:$0xff] %v567_v46  ;;  %v576_v44 = vsel %vm575_vm13, %v567_v46, %v516_v36 }
 0x578   :  { %859 = shalt.err (!%p856_p4)
}
 0x579   :  { %s860_s20 = scalar_lea.hbm %s1206_s5, 896 }
 0x57a   :  { %p861_p5 = scmp.ne.s32.totalorder %s1206_s5, %s860_s20  ;;  %p864_p6 = scmp.lt.u32.totalorder %s860_s20, %s1206_s5 }
 0x57c   :  { %p866_p7 = pnand %p864_p6, %p861_p5 }
 0x57e   :  { %869 = shalt.err (!%p866_p7)
}
 0x57f   :  { %s901_s24 = smov 128   ;;  %s902_s25 = smov 8   ;;  %577 = vst [vmem:[#allocation4] sm:$0xff] %v576_v44 }
 0x580   :  { %589 = dma.vmem_to_hbm [thread:$0]  %s584_s14, 896, %s1206_s5, [#allocation3], %s901_s24, %s901_s24, %s902_s25  }
 0x581   :  { %s870_s28 = scalar_lea.vmem %s1170_s16, 128  ;;  %p875_p9 = scmp.lt.s32.totalorder %s1170_s16, %s1170_s16 }
 0x582   :  { %p871_p8 = scmp.ne.s32.totalorder %s1170_s16, %s870_s28  ;;  %p876_p10 = scmp.lt.s32.totalorder %s870_s28, %s870_s28 }
 0x584   :  { %p877_p11 = por %p876_p10, %p875_p9 }
 0x586   :  { %p878_p12 = pnand %p877_p11, %p871_p8 }
 0x588   :  { %881 = shalt.err (!%p878_p12)
}
 0x589   :  { %s882_s7 = scalar_lea.hbm %s1207_s6, 128 }
 0x58a   :  { %p883_p13 = scmp.ne.s32.totalorder %s1207_s6, %s882_s7  ;;  %p886_p0 = scmp.lt.u32.totalorder %s882_s7, %s1207_s6 }
 0x58c   :  { %p888_p1 = pnand %p886_p0, %p883_p13 }
 0x58e   :  { %891 = shalt.err (!%p888_p1)
}
 0x58f   :  { %599 = dma.vmem_to_hbm [thread:$0]  %s1170_s16, 128, %s1207_s6, [#allocation5]  }
 0x590   :  { %892 = dma.done.wait [#allocation3], 896  }
 0x591   :  { %893 = vsyncadd [#allocation3], 4294966400 }
 0x592   :  { %894 = dma.done.wait [#allocation5], 128  }
 0x593   :  { %895 = vsyncadd [#allocation5], 4294967168 }
 0x594   :  { %606 = vsyncpa [#allocation3], 1 }
 0x595   :  { %607 = vsyncpa [#allocation5], 1 }

</bundles_post_ra>
